<compile_context>
chip_gen: v7x
topology: tpu7x:2x2x1
jax: 0.10.0
libtpu: 0.0.40
codegen_flags: <defaults>
</compile_context>

<pallas_src>
import jax
import jax.numpy as jnp
from jax.experimental import pallas as pl
from jax.experimental.pallas import tpu as pltpu


def _sublayer_connection_kernel(x_ref, a2_ref, b2_ref, w_ref, wb_ref, o_ref):
    eps = 1e-6
    x = x_ref[...].astype(jnp.float32)                       # (TM, F) tile
    feats = x.shape[-1]

    # LayerNorm with unbiased std (torch .std default) and eps added to std.
    mean = jnp.mean(x, axis=-1, keepdims=True)
    centered = x - mean
    var_unbiased = jnp.sum(centered * centered, axis=-1, keepdims=True) * (
        1.0 / (feats - 1))
    std = jnp.sqrt(var_unbiased)
    # Division -> EUP reciprocal (own VLIW slot); fold a_2 into the scale.
    inv = pl.reciprocal(std + eps, approx=True)               # (TM, 1)
    normed = centered * (a2_ref[...] * inv) + b2_ref[...]     # (TM, F), f32

    # sublayer: Linear(F -> F) on the MXU with bf16 operands, f32 accumulate.
    sub = jnp.dot(normed.astype(jnp.bfloat16), w_ref[...],
                  preferred_element_type=jnp.float32)
    sub = sub + wb_ref[...]

    # dropout (eval mode) == identity; residual add in f32.
    o_ref[...] = (x + sub).astype(o_ref.dtype)


def _choose_row_tile(R, F, weight_bytes, x_itemsize):
    """Pick TM so double-buffered in+out tiles + resident weight stay well
    under the smallest scoped-VMEM default (32 MiB on v7x)."""
    budget = 24 << 20
    per_row = 2 * (2 * F * x_itemsize)          # in + out tiles, 2-deep buffers
    avail = max(budget - weight_bytes, per_row * 8)
    tm = int(min(avail // per_row, 1024))
    if tm >= R:
        return R                                 # full extent: always legal
    return max(8, (tm // 8) * 8)                 # sublane-aligned tile


def sublayer_connection(x, a2, b2, w, wb):
    """x: (B, S, F); a2,b2: (F,); w: (F, F); wb: (F,). Returns (B, S, F)."""
    B, S, F = x.shape
    R = B * S
    x2 = x.reshape(R, F)
    a2_2d = a2.reshape(1, F).astype(jnp.float32)
    b2_2d = b2.reshape(1, F).astype(jnp.float32)
    wb_2d = wb.reshape(1, F).astype(jnp.float32)
    w_bf16 = w.astype(jnp.bfloat16)              # halve resident weight bytes

    x_itemsize = jnp.dtype(x.dtype).itemsize
    weight_bytes = 2 * F * F * 2                 # (conservatively 2 buffers)
    TM = _choose_row_tile(R, F, weight_bytes, x_itemsize)
    grid = (pl.cdiv(R, TM),)

    needed = (2 * TM * F * x_itemsize            # x tiles (double buffered)
              + 2 * TM * F * x_itemsize          # out tiles (double buffered)
              + weight_bytes                     # resident bf16 weight
              + 6 * F * 4)                       # a2 / b2 / wb (tiny)
    vmem_limit = min(max(2 * needed + (2 << 20), 8 << 20), 40 << 20)

    out = pl.pallas_call(
        _sublayer_connection_kernel,
        out_shape=jax.ShapeDtypeStruct((R, F), x.dtype),
        grid_spec=pltpu.PrefetchScalarGridSpec(
            num_scalar_prefetch=0,
            grid=grid,
            in_specs=[
                pl.BlockSpec((TM, F), lambda i: (i, 0)),   # x row tile
                pl.BlockSpec((1, F), lambda i: (0, 0)),    # a_2 (resident)
                pl.BlockSpec((1, F), lambda i: (0, 0)),    # b_2 (resident)
                pl.BlockSpec((F, F), lambda i: (0, 0)),    # weight (resident)
                pl.BlockSpec((1, F), lambda i: (0, 0)),    # bias   (resident)
            ],
            out_specs=pl.BlockSpec((TM, F), lambda i: (i, 0)),
        ),
        compiler_params=pltpu.CompilerParams(
            dimension_semantics=("parallel",),
            vmem_limit_bytes=int(vmem_limit)),
        # input_output_aliases={0: 0} would save an R x F HBM buffer but would
        # donate x's storage; omitted so callers can keep using x afterwards.
    )(x2, a2_2d, b2_2d, w_bf16, wb_2d)
    return out.reshape(B, S, F)


def _reference(x, a2, b2, w, wb):
    """Pure-JAX reference matching the kernel (bf16 matmul, f32 accumulate)."""
    eps = 1e-6
    xf = x.astype(jnp.float32)
    mean = jnp.mean(xf, axis=-1, keepdims=True)
    c = xf - mean
    F = x.shape[-1]
    std = jnp.sqrt(jnp.sum(c * c, axis=-1, keepdims=True) / (F - 1))
    normed = a2 * c / (std + eps) + b2
    sub = jnp.dot(normed.astype(jnp.bfloat16), w.astype(jnp.bfloat16),
                  preferred_element_type=jnp.float32) + wb
    return (xf + sub).astype(x.dtype)


if __name__ == "__main__":
    B, S, F = 2, 8, 32
    key = jax.random.PRNGKey(0)
    kx, kw, kb = jax.random.split(key, 3)

    x = jax.random.normal(kx, (B, S, F), dtype=jnp.float32)
    # LayerNorm params as in __init__: ones / zeros.
    a2 = jnp.ones((F,), dtype=jnp.float32)
    b2 = jnp.zeros((F,), dtype=jnp.float32)
    # Deterministic sublayer (Linear F->F) parameters.
    w = jax.random.normal(kw, (F, F), dtype=jnp.float32) / jnp.sqrt(F)
    wb = jax.random.normal(kb, (F,), dtype=jnp.float32) * 0.01

    out = sublayer_connection(x, a2, b2, w, wb)
    out = jax.block_until_ready(out)

    ref = _reference(x, a2, b2, w, wb)
    assert out.shape == (B, S, F)
    assert jnp.allclose(out, ref, atol=1e-2, rtol=1e-2), (
        float(jnp.max(jnp.abs(out - ref))))
    print("KERNEL_OK")
</pallas_src>

<mosaic_0001>
module attributes {stable_mosaic.version = 11 : i64} {
  func.func @_sublayer_connection_kernel(%arg0: i32, %arg1: memref<16x32xf32, #tpu.memory_space<vmem>>, %arg2: memref<1x32xf32, #tpu.memory_space<vmem>>, %arg3: memref<1x32xf32, #tpu.memory_space<vmem>>, %arg4: memref<32x32xbf16, #tpu.memory_space<vmem>>, %arg5: memref<1x32xf32, #tpu.memory_space<vmem>>, %arg6: memref<16x32xf32, #tpu.memory_space<vmem>>) attributes {dimension_semantics = [#tpu.dimension_semantics<parallel>], iteration_bounds = array<i64: 1>, scalar_prefetch = 0 : i64, scratch_operands = 0 : i64, tpu.core_type = #tpu.core_type<tc>, window_params = [{transform_indices = @transform_0, window_bounds = array<i64: 16, 32>}, {pipeline_mode = #tpu.pipeline_mode<synchronous>, transform_indices = @transform_1, window_bounds = array<i64: 1, 32>}, {pipeline_mode = #tpu.pipeline_mode<synchronous>, transform_indices = @transform_2, window_bounds = array<i64: 1, 32>}, {pipeline_mode = #tpu.pipeline_mode<synchronous>, transform_indices = @transform_3, window_bounds = array<i64: 32, 32>}, {pipeline_mode = #tpu.pipeline_mode<synchronous>, transform_indices = @transform_4, window_bounds = array<i64: 1, 32>}, {transform_indices = @transform_5, window_bounds = array<i64: 16, 32>}]} {
    %c0 = arith.constant 0 : index
    %c0_0 = arith.constant 0 : index
    %0 = vector.load %arg1[%c0, %c0_0] : memref<16x32xf32, #tpu.memory_space<vmem>>, vector<16x32xf32>
    %cst = arith.constant dense<0.000000e+00> : vector<16xf32>
    %1 = vector.multi_reduction <add>, %0, %cst [1] : vector<16x32xf32> to vector<16xf32>
    %2 = vector.shape_cast %1 : vector<16xf32> to vector<16x1xf32>
    %cst_1 = arith.constant 3.200000e+01 : f32
    %3 = vector.broadcast %cst_1 : f32 to vector<16x1xf32>
    %4 = arith.divf %2, %3 : vector<16x1xf32>
    %5 = vector.broadcast %4 : vector<16x1xf32> to vector<16x32xf32>
    %6 = arith.subf %0, %5 : vector<16x32xf32>
    %7 = arith.mulf %6, %6 : vector<16x32xf32>
    %cst_2 = arith.constant dense<0.000000e+00> : vector<16xf32>
    %8 = vector.multi_reduction <add>, %7, %cst_2 [1] : vector<16x32xf32> to vector<16xf32>
    %9 = vector.shape_cast %8 : vector<16xf32> to vector<16x1xf32>
    %cst_3 = arith.constant 0.0322580636 : f32
    %10 = vector.broadcast %cst_3 : f32 to vector<16x1xf32>
    %11 = arith.mulf %9, %10 : vector<16x1xf32>
    %12 = math.sqrt %11 : vector<16x1xf32>
    %cst_4 = arith.constant 9.99999997E-7 : f32
    %13 = vector.broadcast %cst_4 : f32 to vector<16x1xf32>
    %14 = arith.addf %12, %13 : vector<16x1xf32>
    %15 = tpu.reciprocal %14 {approx = true} : vector<16x1xf32> -> vector<16x1xf32>
    %c0_5 = arith.constant 0 : index
    %c0_6 = arith.constant 0 : index
    %16 = vector.load %arg2[%c0_5, %c0_6] : memref<1x32xf32, #tpu.memory_space<vmem>>, vector<1x32xf32>
    %17 = vector.broadcast %16 : vector<1x32xf32> to vector<16x32xf32>
    %18 = vector.broadcast %15 : vector<16x1xf32> to vector<16x32xf32>
    %19 = arith.mulf %17, %18 : vector<16x32xf32>
    %20 = arith.mulf %6, %19 : vector<16x32xf32>
    %c0_7 = arith.constant 0 : index
    %c0_8 = arith.constant 0 : index
    %21 = vector.load %arg3[%c0_7, %c0_8] : memref<1x32xf32, #tpu.memory_space<vmem>>, vector<1x32xf32>
    %22 = vector.broadcast %21 : vector<1x32xf32> to vector<16x32xf32>
    %23 = arith.addf %20, %22 : vector<16x32xf32>
    %24 = arith.truncf %23 : vector<16x32xf32> to vector<16x32xbf16>
    %c0_9 = arith.constant 0 : index
    %c0_10 = arith.constant 0 : index
    %25 = vector.load %arg4[%c0_9, %c0_10] : memref<32x32xbf16, #tpu.memory_space<vmem>>, vector<32x32xbf16>
    %cst_11 = arith.constant dense<0.000000e+00> : vector<16x32xf32>
    %26 = tpu.matmul %24, %25, %cst_11 {dimension_numbers = #tpu.dot_dimension_numbers<[1], [0], [0], [1], [0, 0, 1, 1], [], []>} : vector<16x32xbf16>, vector<32x32xbf16>, vector<16x32xf32> -> vector<16x32xf32>
    %c0_12 = arith.constant 0 : index
    %c0_13 = arith.constant 0 : index
    %27 = vector.load %arg5[%c0_12, %c0_13] : memref<1x32xf32, #tpu.memory_space<vmem>>, vector<1x32xf32>
    %28 = vector.broadcast %27 : vector<1x32xf32> to vector<16x32xf32>
    %29 = arith.addf %26, %28 : vector<16x32xf32>
    %30 = arith.addf %0, %29 : vector<16x32xf32>
    %c0_14 = arith.constant 0 : index
    %c0_15 = arith.constant 0 : index
    %31 = vector.load %arg6[%c0_14, %c0_15] : memref<16x32xf32, #tpu.memory_space<vmem>>, vector<16x32xf32>
    tpu.vector_store %arg6[%c0_14, %c0_15], %30 {strides = array<i32>} : memref<16x32xf32, #tpu.memory_space<vmem>>, vector<16x32xf32>,
    return
  }
  func.func @transform_0(%arg0: i32) -> (i32, i32) {
    %c0_i32 = arith.constant 0 : i32
    %c0_i32_0 = arith.constant 0 : i32
    return %arg0, %c0_i32 : i32, i32
  }
  func.func @transform_1(%arg0: i32) -> (i32, i32) {
    %c0_i32 = arith.constant 0 : i32
    %c0_i32_0 = arith.constant 0 : i32
    %c0_i32_1 = arith.constant 0 : i32
    return %c0_i32, %c0_i32_0 : i32, i32
  }
  func.func @transform_2(%arg0: i32) -> (i32, i32) {
    %c0_i32 = arith.constant 0 : i32
    %c0_i32_0 = arith.constant 0 : i32
    %c0_i32_1 = arith.constant 0 : i32
    return %c0_i32, %c0_i32_0 : i32, i32
  }
  func.func @transform_3(%arg0: i32) -> (i32, i32) {
    %c0_i32 = arith.constant 0 : i32
    %c0_i32_0 = arith.constant 0 : i32
    %c0_i32_1 = arith.constant 0 : i32
    return %c0_i32, %c0_i32_0 : i32, i32
  }
  func.func @transform_4(%arg0: i32) -> (i32, i32) {
    %c0_i32 = arith.constant 0 : i32
    %c0_i32_0 = arith.constant 0 : i32
    %c0_i32_1 = arith.constant 0 : i32
    return %c0_i32, %c0_i32_0 : i32, i32
  }
  func.func @transform_5(%arg0: i32) -> (i32, i32) {
    %c0_i32 = arith.constant 0 : i32
    %c0_i32_0 = arith.constant 0 : i32
    return %arg0, %c0_i32 : i32, i32
  }
}

</mosaic_0001>

<bundles_post_ra>
// kernel: tpu_custom_call.1
= control target key start
LH: loop header
LB: loop body
LE: loop exit
PB: predicated region body
PF: predicated region fallthrough
CT: control target
= control target key end

     0   :  { %10 = vsyncpa [#allocation3], 0  ;;  %s417_s0 = inlined_call_operand.hbm [shape: f32[16,32], index: 0, kind: input, shape index: {}]   ;;  %s418_s1 = inlined_call_operand.vmem [shape: f32[1,32], index: 1, kind: input, shape index: {}]   ;;  %s419_s2 = inlined_call_operand.vmem [shape: f32[1,32], index: 2, kind: input, shape index: {}]   ;;  %s420_s3 = inlined_call_operand.hbm [shape: bf16[32,32], index: 3, kind: input, shape index: {}]   ;;  %s421_s4 = inlined_call_operand.vmem [shape: f32[1,32], index: 4, kind: input, shape index: {}]   ;;  %s422_s5 = inlined_call_operand.hbm [shape: f32[16,32], index: 5, kind: output, shape index: {}]  }
   0x1   :  { %11 = vsyncpa [#allocation6], 0 }
   0x2   :  { %12 = vsyncpa [#allocation4], 0  ;;  %s310_s18 = smov [#allocation2]   ;;  %s238_s22 = scalar_lea.hbm %s417_s0, 256 }
   0x3   :  { %s18_s19 = sshll.u32 %s310_s18, 4  ;;  %p239_p0 = scmp.ne.s32.totalorder %s417_s0, %s238_s22  ;;  %s19_s19 = int_to_ptr.vmem [resolvable:$true] %s18_s19 }
   0x4   :  { %p242_p1 = scmp.lt.u32.totalorder %s238_s22, %s417_s0 }
   0x6   :  { %p244_p2 = pnand %p242_p1, %p239_p0 }
   0x8   :  { %247 = shalt.err (!%p244_p2)
}
   0x9   :  { %s248_s27 = scalar_lea.vmem %s19_s19, 256  ;;  %p253_p4 = scmp.lt.s32.totalorder %s19_s19, %s19_s19 }
   0xa   :  { %p249_p3 = scmp.ne.s32.totalorder %s19_s19, %s248_s27  ;;  %p254_p5 = scmp.lt.s32.totalorder %s248_s27, %s248_s27 }
   0xc   :  { %p255_p6 = por %p254_p5, %p253_p4 }
   0xe   :  { %p256_p7 = pnand %p255_p6, %p249_p3 }
  0x10   :  { %259 = shalt.err (!%p256_p7)
}
  0x11   :  { %s311_s28 = smov 128   ;;  %s312_s29 = smov 8  }
  0x12   :  { %24 = dma.hbm_to_vmem [thread:$0]  %s417_s0, 256, %s19_s19, [#allocation3], %s311_s28, %s311_s28, %s312_s29  }
  0x13   :  { %s313_s7 = smov [#allocation5]   ;;  %s260_s11 = scalar_lea.hbm %s420_s3, 256 }
  0x14   :  { %s34_s8 = sshll.u32 %s313_s7, 4  ;;  %p261_p8 = scmp.ne.s32.totalorder %s420_s3, %s260_s11  ;;  %s35_s8 = int_to_ptr.vmem [resolvable:$true] %s34_s8 }
  0x15   :  { %p264_p9 = scmp.lt.u32.totalorder %s260_s11, %s420_s3 }
  0x17   :  { %p266_p10 = pnand %p264_p9, %p261_p8 }
  0x19   :  { %269 = shalt.err (!%p266_p10)
}
  0x1a   :  { %s270_s16 = scalar_lea.vmem %s35_s8, 256  ;;  %p275_p12 = scmp.lt.s32.totalorder %s35_s8, %s35_s8 }
  0x1b   :  { %p271_p11 = scmp.ne.s32.totalorder %s35_s8, %s270_s16  ;;  %p276_p13 = scmp.lt.s32.totalorder %s270_s16, %s270_s16 }
  0x1d   :  { %p277_p0 = por %p276_p13, %p275_p12 }
  0x1f   :  { %p278_p1 = pnand %p277_p0, %p271_p11 }
  0x21   :  { %281 = shalt.err (!%p278_p1)
}
  0x22   :  { %s314_s0 = smov 64   ;;  %s315_s17 = smov 4  }
  0x23   :  { %40 = dma.hbm_to_vmem [thread:$0]  %s420_s3, 256, %s35_s8, [#allocation6], %s314_s0, %s314_s0, %s315_s17  }
  0x24   :  { %304 = dma.done.wait [#allocation3], 256  }
  0x25   :  { %305 = vsyncadd [#allocation3], 4294967040 }
  0x26   :  { %306 = dma.done.wait [#allocation6], 256  }
  0x27   :  { %307 = vsyncadd [#allocation6], 4294967040  ;;  %vm52_vm0 = vcmask 261120   ;;  %v376_v0 = vld [vmem:[#allocation2] sm:$0xff]  ;;  %v378_v1 = vld [vmem:[#allocation2 + $0x8] sm:$0xff]  ;;  %v316_v15 = vmov 0.0  }
  0x28   :  { %v53_v2 = vsel %vm52_vm0, %v376_v0, 0.0  ;;  %v56_v3 = vsel %vm52_vm0, %v378_v1, 0.0  ;;  %v228_v14 = vld [vmem:[#allocation5] sm:$0xff]   ;;  %211 = vmatprep.subr.bf16.mxu0 %v316_v15  ;;  %vm317_vm1 = vmmov 0   ;;  %v229_v16 = vld [vmem:[#allocation5 + $0x8] sm:$0xff]  }
  0x29   :  { %54 = vadd.xlane.f32.xlu0 %v53_v2  ;;  %215 = vmatprep.mubr.msk.bf16.mxu0 %vm317_vm1, %v316_v15  ;;  %v202_v33 = vld [vmem:[%s418_s1] ss:$0 sm:$0xff]  ;;  %s318_s1 = smov [#allocation7]  }
  0x2a   :  { %212 = vmatpush3.bf16.msra.mxu0 %v228_v14  ;;  %v203_v39 = vld [vmem:[%s419_s2] ss:$0 sm:$0xff]  ;;  %s189_s25 = sshll.u32 %s318_s1, 4  ;;  %s190_s25 = int_to_ptr.vmem [resolvable:$true] %s189_s25 }
  0x2b   :  { %213 = vmatprep.subr.bf16.mxu0 %v316_v15  ;;  %v204_v44 = vld [vmem:[%s421_s4] ss:$0 sm:$0xff]  ;;  %s282_s2 = scalar_lea.vmem %s190_s25, 256  ;;  %p287_p3 = scmp.lt.s32.totalorder %s190_s25, %s190_s25 }
  0x2c   :  { %p283_p2 = scmp.ne.s32.totalorder %s190_s25, %s282_s2  ;;  %p288_p4 = scmp.lt.s32.totalorder %s282_s2, %s282_s2 }
  0x2d   :  { %57 = vadd.xlane.f32.xlu0 %v56_v3 }
  0x2e   :  { %214 = vmatpush3.bf16.msra.mxu0 %v229_v16  ;;  %p289_p5 = por %p288_p4, %p287_p3 }
  0x30   :  { %p290_p6 = pnand %p289_p5, %p283_p2 }
  0xb6   :  { %v55_v4 = vpop.xlane.xlu0 %54 }
  0xb7   :  { %v60_v5 = vmul.f32 0.03125, %v55_v4 }
  0xb9   :  { %v62_v6 = vsub.f32 %v376_v0, %v60_v5 }
  0xba   :  { %v58_v7 = vpop.xlane.xlu0 %57 }
  0xbb   :  { %v61_v8 = vmul.f32 0.03125, %v58_v7  ;;  %v64_v9 = vmul.f32 %v62_v6, %v62_v6 }
  0xbd   :  { %v63_v10 = vsub.f32 %v378_v1, %v61_v8  ;;  %v66_v11 = vsel %vm52_vm0, %v64_v9, 0.0 }
  0xbe   :  { %67 = vadd.xlane.f32.xlu1 %v66_v11 }
  0xbf   :  { %v65_v12 = vmul.f32 %v63_v10, %v63_v10 }
  0xc1   :  { %v69_v13 = vsel %vm52_vm0, %v65_v12, 0.0 }
  0xc2   :  { %70 = vadd.xlane.f32.xlu1 %v69_v13 }
 0x14b   :  { %v68_v17 = vpop.xlane.xlu1 %67 }
 0x14c   :  { %v72_v18 = vmul.f32 0.032258064, %v68_v17 }
 0x14e   :  { %230 = vrsqrt.f32 %v72_v18  ;;  %vm76_vm2 = vcmp.eq.f32.partialorder %v72_v18, inf  ;;  %v79_v23 = vand.u32 2147483648, %v72_v18  ;;  %vm78_vm3 = vcmp.eq.f32.partialorder %v72_v18, 0.0 }
 0x14f   :  { %v71_v19 = vpop.xlane.xlu1 %70 }
 0x150   :  { %v73_v20 = vmul.f32 0.032258064, %v71_v19 }
 0x152   :  { %232 = vrsqrt.f32 %v73_v20  ;;  %vm83_vm4 = vcmp.eq.f32.partialorder %v73_v20, inf  ;;  %v86_v29 = vand.u32 2147483648, %v73_v20  ;;  %vm85_vm5 = vcmp.eq.f32.partialorder %v73_v20, 0.0 }
 0x158   :  { %v231_v21 = vpop.eup %230 }
 0x159   :  { %v75_v22 = vmul.f32 %v231_v21, %v72_v18 }
 0x15b   :  { %v77_v24 = vsel %vm76_vm2, %v72_v18, %v75_v22 }
 0x15c   :  { %v233_v25 = vpop.eup %232  ;;  %v80_v26 = vsel %vm78_vm3, %v79_v23, %v77_v24 }
 0x15d   :  { %v88_v27 = vadd.f32 1e-06, %v80_v26  ;;  %v82_v28 = vmul.f32 %v233_v25, %v73_v20 }
 0x15f   :  { %234 = vrcp.f32 %v88_v27  ;;  %v84_v30 = vsel %vm83_vm4, %v73_v20, %v82_v28 }
 0x160   :  { %v87_v31 = vsel %vm85_vm5, %v86_v29, %v84_v30 }
 0x161   :  { %v89_v32 = vadd.f32 1e-06, %v87_v31 }
 0x163   :  { %236 = vrcp.f32 %v89_v32 }
 0x169   :  { %v235_v34 = vpop.eup %234 }
 0x16a   :  { %v99_v35 = vmul.f32 %v235_v34, %v202_v33 }
 0x16c   :  { %v101_v38 = vmul.f32 %v99_v35, %v62_v6 }
 0x16d   :  { %v237_v36 = vpop.eup %236 }
 0x16e   :  { %v100_v37 = vmul.f32 %v237_v36, %v202_v33  ;;  %v110_v41 = vadd.f32 %v203_v39, %v101_v38 }
 0x170   :  { %v102_v40 = vmul.f32 %v100_v37, %v63_v10 }
 0x172   :  { %v111_v42 = vadd.f32 %v203_v39, %v102_v40 }
 0x174   :  { %v112_v43 = vpack.c.bf16 %v111_v42, %v110_v41 }
 0x176   :  { %216 = vmatmul.mubr.msk.bf16.vlgmr.msra.gmra.mrb[0].mxu0 %vm52_vm0, %v112_v43 }
 0x249   :  { %v173_v45 = vpop.f32.mrb[0].mxu0 }
 0x24a   :  { %v174_v46 = vadd.f32 %v204_v44, %v173_v45  ;;  %v217_v47 = vpop.f32.mrb[1].mxu0 }
 0x24b   :  { %v176_v48 = vpop.f32.mrb[2].mxu0 }
 0x24c   :  { %v180_v49 = vadd.f32 %v174_v46, %v376_v0  ;;  %v177_v50 = vadd.f32 %v204_v44, %v176_v48  ;;  %v218_v51 = vpop.f32.mrb[3].mxu0 }
 0x24e   :  { %182 = vst.msk [vmem:[#allocation7] sm:$0xff] %vm52_vm0, %v180_v49  ;;  %v181_v52 = vadd.f32 %v177_v50, %v378_v1 }
 0x250   :  { %183 = vst.msk [vmem:[#allocation7 + $0x8] sm:$0xff] %vm52_vm0, %v181_v52 }
 0x251   :  { %293 = shalt.err (!%p290_p6)
}
 0x252   :  { %s294_s27 = scalar_lea.hbm %s422_s5, 256 }
 0x253   :  { %p295_p7 = scmp.ne.s32.totalorder %s422_s5, %s294_s27  ;;  %p298_p8 = scmp.lt.u32.totalorder %s294_s27, %s422_s5 }
 0x255   :  { %p300_p9 = pnand %p298_p8, %p295_p7 }
 0x257   :  { %303 = shalt.err (!%p300_p9)
}
 0x258   :  { %195 = dma.vmem_to_hbm [thread:$0]  %s190_s25, 256, %s422_s5, [#allocation4], %s311_s28, %s311_s28, %s312_s29  }
 0x259   :  { %308 = dma.done.wait [#allocation4], 256  }
 0x25a   :  { %309 = vsyncadd [#allocation4], 4294967040 }
 0x25b   :  { %199 = vsyncpa [#allocation3], 1 }
 0x25c   :  { %200 = vsyncpa [#allocation6], 1 }
 0x25d   :  { %201 = vsyncpa [#allocation4], 1 }

</bundles_post_ra>
